<compile_context>
chip_gen: v7x
topology: tpu7x:2x2x1
jax: 0.10.0
libtpu: 0.0.40
codegen_flags: <defaults>
</compile_context>

<pallas_src>
from functools import partial

import jax
import jax.numpy as jnp
from jax.experimental import pallas as pl
from jax.experimental.pallas import tpu as pltpu


def gating_kernel(wt_ref, b_ref, x_ref, out_ref, *, k):
    x = x_ref[...]                                   # (TM, D) natural layout
    wt = wt_ref[...]                                 # (D, E)  resident
    b = b_ref[...].astype(jnp.float32)               # (E, 1)  resident

    # MXU matmul in natural orientation, f32 accumulate; then transpose only
    # the small (TM, E) logits to a lane-dense (E, TM) tile.
    s = jnp.dot(x, wt, preferred_element_type=jnp.float32)      # (TM, E)
    logits = jnp.transpose(s) + b                                # (E, TM)

    E = logits.shape[0]
    ids_col = jax.lax.broadcasted_iota(jnp.int32, (E, 1), 0)     # (E, 1)

    # Iterative top-k over the small (sublane) expert axis.  Only k (1, TM)
    # value rows + k (1, TM) index rows stay live; ties pick the lowest index
    # (first occurrence), matching torch.topk / jax.lax.top_k.
    work = logits
    vals = []
    sels = []
    for _ in range(k):
        mval = jnp.max(work, axis=0, keepdims=True)                   # (1, TM)
        sel = jnp.min(jnp.where(work == mval, ids_col, E),
                      axis=0, keepdims=True)                          # (1, TM) i32
        vals.append(mval)
        sels.append(sel)
        work = jnp.where(ids_col == sel, -jnp.inf, work)

    # Softmax over the k selected values; vals[0] is the per-column max.
    m = vals[0]
    exps = [jnp.exp(v - m) for v in vals]
    denom = exps[0]
    for e in exps[1:]:
        denom = denom + e
    # Exact reciprocal: approx=True could exceed the 1e-5 test tolerance.
    inv = pl.reciprocal(denom, approx=False)

    # Scatter softmaxed gate weights back into the dense expert axis; the
    # per-slot one-hots are regenerated on the fly (disjoint selects).
    out = jnp.zeros_like(logits)
    for e, sel in zip(exps, sels):
        out = jnp.where(ids_col == sel, e * inv, out)

    out_ref[...] = out.astype(out_ref.dtype)


def gating_func(x, weight, bias, *, k=2, tm=2048,
                vmem_budget_bytes=48 * 1024 * 1024):
    """x: (B, D); weight: (E, D) (nn.Linear layout); bias: (E,). Returns (B, E) f32."""
    B, D = x.shape
    E, D2 = weight.shape
    assert D == D2
    assert 1 <= k <= E

    itemsize = jnp.dtype(jnp.float32).itemsize

    # Largest 128-multiple lane tile that fits the VMEM budget
    # (double-buffered x tile + output tile, plus the resident weight/bias).
    def footprint(t):
        return (2 * (t * D + E * t) + 2 * (E * D + E)) * itemsize

    tm_cap = max(128, (tm // 128) * 128)
    while tm_cap > 128 and footprint(tm_cap) > vmem_budget_bytes:
        tm_cap //= 2

    if B < 256:
        # Small batch: a single full-extent block (no padding, no masking).
        tm_eff = B
    else:
        # >= 2 grid steps so the batch axis can shard across v7x's two cores.
        half = pl.cdiv(B, 2)
        tm_eff = min(tm_cap, pl.cdiv(half, 128) * 128)
    grid = pl.cdiv(B, tm_eff)

    wt = weight.T                                     # (D, E), tiny one-time cost
    b2 = bias.reshape(E, 1)

    cost = pl.CostEstimate(
        flops=2 * B * D * E,
        transcendentals=k * B,
        bytes_accessed=(B * D + D * E + E + E * B) * itemsize,
    )

    out_t = pl.pallas_call(
        partial(gating_kernel, k=k),
        out_shape=jax.ShapeDtypeStruct((E, B), jnp.float32),
        grid_spec=pltpu.PrefetchScalarGridSpec(
            num_scalar_prefetch=0,
            grid=(grid,),
            in_specs=[
                pl.BlockSpec((D, E), lambda i: (0, 0)),        # weight^T (resident)
                pl.BlockSpec((E, 1), lambda i: (0, 0)),        # bias     (resident)
                pl.BlockSpec((tm_eff, D), lambda i: (i, 0)),   # x batch tile (natural)
            ],
            out_specs=pl.BlockSpec((E, tm_eff), lambda i: (0, i)),
        ),
        compiler_params=pltpu.CompilerParams(
            dimension_semantics=("parallel",),
            vmem_limit_bytes=vmem_budget_bytes,
        ),
        cost_estimate=cost,
    )(wt, b2, x)

    # Cheap wrapper-side transpose of the small (E, B) result back to (B, E).
    return out_t.T


def _reference(x, weight, bias, k):
    logits = x @ weight.T + bias
    vals, idx = jax.lax.top_k(logits, k)
    gw = jax.nn.softmax(vals, axis=-1)
    ref = jnp.zeros_like(logits)
    rows = jnp.arange(logits.shape[0])[:, None]
    return ref.at[rows, idx].set(gw)


if __name__ == "__main__":
    batch, input_dim, num_experts, k = 16, 32, 8, 2

    key = jax.random.PRNGKey(0)
    kx, kw, kb = jax.random.split(key, 3)

    x = jax.random.normal(kx, (batch, input_dim), dtype=jnp.float32)
    # Deterministic nn.Linear-style init: U(-1/sqrt(D), 1/sqrt(D)).
    bound = 1.0 / (input_dim ** 0.5)
    weight = jax.random.uniform(kw, (num_experts, input_dim),
                                minval=-bound, maxval=bound, dtype=jnp.float32)
    bias = jax.random.uniform(kb, (num_experts,),
                              minval=-bound, maxval=bound, dtype=jnp.float32)

    out = gating_func(x, weight, bias, k=k)
    out = jax.block_until_ready(out)

    ref = _reference(x, weight, bias, k)
    assert out.shape == (batch, num_experts)
    assert jnp.allclose(out, ref, atol=1e-5, rtol=1e-5)

    print("KERNEL_OK")
</pallas_src>

<mosaic_0001>
module attributes {stable_mosaic.version = 11 : i64} {
  func.func @gating_kernel(%arg0: i32, %arg1: memref<32x8xf32, #tpu.memory_space<vmem>>, %arg2: memref<8x1xf32, #tpu.memory_space<vmem>>, %arg3: memref<16x32xf32, #tpu.memory_space<vmem>>, %arg4: memref<8x16xf32, #tpu.memory_space<vmem>>) attributes {dimension_semantics = [#tpu.dimension_semantics<parallel>], iteration_bounds = array<i64: 1>, scalar_prefetch = 0 : i64, scratch_operands = 0 : i64, tpu.core_type = #tpu.core_type<tc>, window_params = [{pipeline_mode = #tpu.pipeline_mode<synchronous>, transform_indices = @transform_0, window_bounds = array<i64: 32, 8>}, {pipeline_mode = #tpu.pipeline_mode<synchronous>, transform_indices = @transform_1, window_bounds = array<i64: 8, 1>}, {transform_indices = @transform_2, window_bounds = array<i64: 16, 32>}, {transform_indices = @transform_3, window_bounds = array<i64: 8, 16>}]} {
    %c0 = arith.constant 0 : index
    %c0_0 = arith.constant 0 : index
    %0 = vector.load %arg3[%c0, %c0_0] : memref<16x32xf32, #tpu.memory_space<vmem>>, vector<16x32xf32>
    %c0_1 = arith.constant 0 : index
    %c0_2 = arith.constant 0 : index
    %1 = vector.load %arg1[%c0_1, %c0_2] : memref<32x8xf32, #tpu.memory_space<vmem>>, vector<32x8xf32>
    %c0_3 = arith.constant 0 : index
    %c0_4 = arith.constant 0 : index
    %2 = vector.load %arg2[%c0_3, %c0_4] : memref<8x1xf32, #tpu.memory_space<vmem>>, vector<8x1xf32>
    %cst = arith.constant dense<0.000000e+00> : vector<16x8xf32>
    %3 = tpu.matmul %0, %1, %cst {dimension_numbers = #tpu.dot_dimension_numbers<[1], [0], [0], [1], [0, 0, 1, 1], [], []>} : vector<16x32xf32>, vector<32x8xf32>, vector<16x8xf32> -> vector<16x8xf32>
    %4 = tpu.transpose %3, [1, 0] : vector<16x8xf32> -> vector<8x16xf32>
    %5 = vector.broadcast %2 : vector<8x1xf32> to vector<8x16xf32>
    %6 = arith.addf %4, %5 : vector<8x16xf32>
    %7 = tpu.iota {dimensions = array<i32: 0>} : vector<8x1xi32>
    %cst_5 = arith.constant dense<0xFF800000> : vector<16xf32>
    %8 = vector.multi_reduction <maximumf>, %6, %cst_5 [0] : vector<8x16xf32> to vector<16xf32>
    %9 = vector.shape_cast %8 : vector<16xf32> to vector<1x16xf32>
    %10 = vector.broadcast %9 : vector<1x16xf32> to vector<8x16xf32>
    %11 = arith.cmpf oeq, %6, %10 : vector<8x16xf32>
    %c8_i32 = arith.constant 8 : i32
    %12 = vector.shape_cast %7 : vector<8x1xi32> to vector<8x1xi32>
    %13 = vector.broadcast %12 : vector<8x1xi32> to vector<8x16xi32>
    %14 = vector.broadcast %c8_i32 : i32 to vector<8x16xi32>
    %15 = arith.select %11, %13, %14 : vector<8x16xi1>, vector<8x16xi32>
    %cst_6 = arith.constant dense<2147483647> : vector<16xi32>
    %16 = vector.multi_reduction <minsi>, %15, %cst_6 [0] : vector<8x16xi32> to vector<16xi32>
    %17 = vector.shape_cast %16 : vector<16xi32> to vector<1x16xi32>
    %18 = vector.broadcast %7 : vector<8x1xi32> to vector<8x16xi32>
    %19 = vector.broadcast %17 : vector<1x16xi32> to vector<8x16xi32>
    %20 = arith.cmpi eq, %18, %19 : vector<8x16xi32>
    %cst_7 = arith.constant 0xFF800000 : f32
    %21 = vector.broadcast %cst_7 : f32 to vector<8x16xf32>
    %22 = arith.select %20, %21, %6 : vector<8x16xi1>, vector<8x16xf32>
    %cst_8 = arith.constant dense<0xFF800000> : vector<16xf32>
    %23 = vector.multi_reduction <maximumf>, %22, %cst_8 [0] : vector<8x16xf32> to vector<16xf32>
    %24 = vector.shape_cast %23 : vector<16xf32> to vector<1x16xf32>
    %25 = vector.broadcast %24 : vector<1x16xf32> to vector<8x16xf32>
    %26 = arith.cmpf oeq, %22, %25 : vector<8x16xf32>
    %c8_i32_9 = arith.constant 8 : i32
    %27 = vector.shape_cast %7 : vector<8x1xi32> to vector<8x1xi32>
    %28 = vector.broadcast %27 : vector<8x1xi32> to vector<8x16xi32>
    %29 = vector.broadcast %c8_i32_9 : i32 to vector<8x16xi32>
    %30 = arith.select %26, %28, %29 : vector<8x16xi1>, vector<8x16xi32>
    %cst_10 = arith.constant dense<2147483647> : vector<16xi32>
    %31 = vector.multi_reduction <minsi>, %30, %cst_10 [0] : vector<8x16xi32> to vector<16xi32>
    %32 = vector.shape_cast %31 : vector<16xi32> to vector<1x16xi32>
    %33 = arith.subf %9, %9 : vector<1x16xf32>
    %34 = math.exp %33 : vector<1x16xf32>
    %35 = arith.subf %24, %9 : vector<1x16xf32>
    %36 = math.exp %35 : vector<1x16xf32>
    %37 = arith.addf %34, %36 : vector<1x16xf32>
    %38 = tpu.reciprocal %37 : vector<1x16xf32> -> vector<1x16xf32>
    %cst_11 = arith.constant 0.000000e+00 : f32
    %39 = vector.broadcast %cst_11 : f32 to vector<8x16xf32>
    %40 = vector.broadcast %7 : vector<8x1xi32> to vector<8x16xi32>
    %41 = vector.broadcast %17 : vector<1x16xi32> to vector<8x16xi32>
    %42 = arith.cmpi eq, %40, %41 : vector<8x16xi32>
    %43 = arith.mulf %34, %38 : vector<1x16xf32>
    %44 = vector.shape_cast %43 : vector<1x16xf32> to vector<1x16xf32>
    %45 = vector.broadcast %44 : vector<1x16xf32> to vector<8x16xf32>
    %46 = arith.select %42, %45, %39 : vector<8x16xi1>, vector<8x16xf32>
    %47 = vector.broadcast %7 : vector<8x1xi32> to vector<8x16xi32>
    %48 = vector.broadcast %32 : vector<1x16xi32> to vector<8x16xi32>
    %49 = arith.cmpi eq, %47, %48 : vector<8x16xi32>
    %50 = arith.mulf %36, %38 : vector<1x16xf32>
    %51 = vector.shape_cast %50 : vector<1x16xf32> to vector<1x16xf32>
    %52 = vector.broadcast %51 : vector<1x16xf32> to vector<8x16xf32>
    %53 = arith.select %49, %52, %46 : vector<8x16xi1>, vector<8x16xf32>
    %c0_12 = arith.constant 0 : index
    %c0_13 = arith.constant 0 : index
    %54 = vector.load %arg4[%c0_12, %c0_13] : memref<8x16xf32, #tpu.memory_space<vmem>>, vector<8x16xf32>
    tpu.vector_store %arg4[%c0_12, %c0_13], %53 {strides = array<i32>} : memref<8x16xf32, #tpu.memory_space<vmem>>, vector<8x16xf32>,
    return
  }
  func.func @transform_0(%arg0: i32) -> (i32, i32) {
    %c0_i32 = arith.constant 0 : i32
    %c0_i32_0 = arith.constant 0 : i32
    %c0_i32_1 = arith.constant 0 : i32
    return %c0_i32, %c0_i32_0 : i32, i32
  }
  func.func @transform_1(%arg0: i32) -> (i32, i32) {
    %c0_i32 = arith.constant 0 : i32
    %c0_i32_0 = arith.constant 0 : i32
    %c0_i32_1 = arith.constant 0 : i32
    return %c0_i32, %c0_i32_0 : i32, i32
  }
  func.func @transform_2(%arg0: i32) -> (i32, i32) {
    %c0_i32 = arith.constant 0 : i32
    %c0_i32_0 = arith.constant 0 : i32
    return %arg0, %c0_i32 : i32, i32
  }
  func.func @transform_3(%arg0: i32) -> (i32, i32) {
    %c0_i32 = arith.constant 0 : i32
    %c0_i32_0 = arith.constant 0 : i32
    return %c0_i32, %arg0 : i32, i32
  }
}

</mosaic_0001>

<bundles_post_ra>
// kernel: tpu_custom_call.1
= control target key start
LH: loop header
LB: loop body
LE: loop exit
PB: predicated region body
PF: predicated region fallthrough
CT: control target
= control target key end

     0   :  { %vm22_vm0 = vcmask 261120   ;;  %v274_v6 = vmov 0   ;;  %s338_s0 = inlined_call_operand.vmem [shape: f32[32,8], index: 0, kind: input, shape index: {}]   ;;  %s339_s1 = inlined_call_operand.vmem [shape: f32[8,1], index: 1, kind: input, shape index: {}]   ;;  %s340_s2 = inlined_call_operand.vmem [shape: f32[16,32], index: 2, kind: input, shape index: {}]   ;;  %s341_s3 = inlined_call_operand.hbm [shape: f32[8,16], index: 3, kind: output, shape index: {}]  }
   0x1   :  { %v17_v0 = vld [vmem:[%s338_s0] sm:$0xff]  ;;  %v18_v1 = vld [vmem:[%s338_s0 + $0x8] sm:$0xff]  ;;  %v19_v2 = vld [vmem:[%s338_s0 + $0x10] sm:$0xff]  ;;  %243 = vset.pattern.permute.xlu0 %v274_v6 }
   0x2   :  { %v232_v3 = vpack.c.bf16 %v18_v1, %v17_v0  ;;  %v20_v4 = vld [vmem:[%s338_s0 + $0x18] sm:$0xff]  ;;  %v15_v5 = vld [vmem:[%s340_s2] sm:$0xff] }
   0x3   :  { %v236_v7 = vpack.c.bf16 %v20_v4, %v19_v2  ;;  %229 = vmatprep.mubr.msk.f32.mxu0 %vm22_vm0, %v15_v5  ;;  %v21_v8 = vld [vmem:[%s339_s1] sm:$0xff] }
   0x4   :  { %8 = vsyncpa [#allocation3], 0  ;;  %233 = vmatprep.subr.bf16.mxu0 %v232_v3  ;;  %138 = vperm.xlu0 %243, %v21_v8   ;;  %v16_v9 = vld [vmem:[%s340_s2 + $0x8] sm:$0xff]  ;;  %vm144_vm1 = vcmask 130048   ;;  %v142_v19 = vlaneseq  ;;  %s275_s1 = smov [#allocation2]  }
   0x5   :  { %235 = vmatpush3.bf16.msra.mxu0 %v232_v3  ;;  %s205_s2 = sshll.u32 %s275_s1, 4  ;;  %s206_s2 = int_to_ptr.vmem [resolvable:$true] %s205_s2 }
   0x6   :  { %237 = vmatprep.subr.bf16.mxu0 %v236_v7  ;;  %v143_v22 = vshrl.u32 %v142_v19, 7  ;;  %s250_s25 = scalar_lea.vmem %s206_s2, 128  ;;  %p255_p1 = scmp.lt.s32.totalorder %s206_s2, %s206_s2 }
   0x7   :  { %p251_p0 = scmp.ne.s32.totalorder %s206_s2, %s250_s25  ;;  %p256_p2 = scmp.lt.s32.totalorder %s250_s25, %s250_s25 }
   0x9   :  { %239 = vmatpush3.bf16.msra.mxu0 %v236_v7  ;;  %p257_p3 = por %p256_p2, %p255_p1 }
   0xb   :  { %p258_p4 = pnand %p257_p3, %p251_p0 }
   0xc   :  { %230 = vmatmul.mubr.msk.f32.vlgmr.msra.gmra.mrb[0].mxu0 %vm22_vm0, %v16_v9 }
  0x83   :  { %v139_v12 = vpop.permute.xlu0 %138 }
  0xdf   :  { %v231_v10 = vpop.f32.mrb[0].mxu0 }
  0xe0   :  { %v95_v11 = vpop.f32.mrb[1].mxu0 }
  0xe1   :  { %104 = vxpose.xlu0.b32.start [1/2] (short) (narrow) %v95_v11, 8 }
  0xe5   :  { %105 = vxpose.xlu0.b32.end [2/2] (short) (narrow) %v231_v10, 8 }
 0x161   :  { %v120_v13 = vpop.trf.xlu0 }
 0x162   :  { %v141_v14 = vadd.f32 %v139_v12, %v120_v13 }
 0x164   :  { %v145_v15 = vsel %vm144_vm1, %v141_v14, -inf }
 0x165   :  { %v146_v16 = vrot.slane %v145_v15, 4 }
 0x167   :  { %v147_v17 = vmax.f32 %v145_v15, %v146_v16 }
 0x169   :  { %v148_v18 = vrot.slane %v147_v17, 2 }
 0x16b   :  { %v149_v20 = vmax.f32 %v147_v17, %v148_v18 }
 0x16d   :  { %v150_v21 = vrot.slane %v149_v20, 1 }
 0x16f   :  { %v151_v23 = vmax.f32 %v149_v20, %v150_v21 }
 0x171   :  { %vm152_vm2 = vcmp.eq.f32.partialorder %v141_v14, %v151_v23  ;;  %v185_v38 = vsub.f32 %v151_v23, %v151_v23 }
 0x172   :  { %v153_v24 = vsel %vm152_vm2, %v143_v22, 8 }
 0x173   :  { %v154_v25 = vsel %vm144_vm1, %v153_v24, 2147483647  ;;  %v186_v41 = vmul.f32 1.442695, %v185_v38 }
 0x174   :  { %v155_v26 = vrot.slane %v154_v25, 4 }
 0x175   :  { %244 = vpow2.f32 %v186_v41 }
 0x176   :  { %vm156_vm3 = vcmp.lt.s32.totalorder %v154_v25, %v155_v26 }
 0x177   :  { %v157_v27 = vsel %vm156_vm3, %v154_v25, %v155_v26 }
 0x178   :  { %v158_v28 = vrot.slane %v157_v27, 2 }
 0x17a   :  { %vm159_vm4 = vcmp.lt.s32.totalorder %v157_v27, %v158_v28 }
 0x17b   :  { %v160_v29 = vsel %vm159_vm4, %v157_v27, %v158_v28 }
 0x17c   :  { %v161_v30 = vrot.slane %v160_v29, 1 }
 0x17e   :  { %vm162_vm5 = vcmp.lt.s32.totalorder %v160_v29, %v161_v30 }
 0x17f   :  { %v163_v31 = vsel %vm162_vm5, %v160_v29, %v161_v30  ;;  %v245_v49 = vpop.eup %244 }
 0x180   :  { %vm164_vm6 = vcmp.eq.s32.totalorder %v143_v22, %v163_v31 }
 0x181   :  { %v165_v32 = vsel %vm164_vm6, -inf, %v141_v14 }
 0x182   :  { %v166_v33 = vsel %vm144_vm1, %v165_v32, -inf }
 0x183   :  { %v167_v34 = vrot.slane %v166_v33, 4 }
 0x185   :  { %v168_v35 = vmax.f32 %v166_v33, %v167_v34 }
 0x187   :  { %v169_v36 = vrot.slane %v168_v35, 2 }
 0x189   :  { %v170_v37 = vmax.f32 %v168_v35, %v169_v36 }
 0x18b   :  { %v171_v39 = vrot.slane %v170_v37, 1 }
 0x18d   :  { %v172_v40 = vmax.f32 %v170_v37, %v171_v39 }
 0x18f   :  { %vm173_vm7 = vcmp.eq.f32.partialorder %v165_v32, %v172_v40  ;;  %v188_v42 = vsub.f32 %v172_v40, %v151_v23 }
 0x190   :  { %v174_v43 = vsel %vm173_vm7, %v143_v22, 8 }
 0x191   :  { %v175_v44 = vsel %vm144_vm1, %v174_v43, 2147483647  ;;  %v189_v45 = vmul.f32 1.442695, %v188_v42 }
 0x192   :  { %v176_v46 = vrot.slane %v175_v44, 4 }
 0x193   :  { %246 = vpow2.f32 %v189_v45 }
 0x194   :  { %vm177_vm8 = vcmp.lt.s32.totalorder %v175_v44, %v176_v46 }
 0x195   :  { %v178_v47 = vsel %vm177_vm8, %v175_v44, %v176_v46 }
 0x196   :  { %v179_v48 = vrot.slane %v178_v47, 2 }
 0x198   :  { %vm180_vm9 = vcmp.lt.s32.totalorder %v178_v47, %v179_v48 }
 0x199   :  { %v181_v52 = vsel %vm180_vm9, %v178_v47, %v179_v48 }
 0x19a   :  { %v182_v53 = vrot.slane %v181_v52, 1 }
 0x19c   :  { %vm183_vm10 = vcmp.lt.s32.totalorder %v181_v52, %v182_v53 }
 0x19d   :  { %v247_v50 = vpop.eup %246  ;;  %v184_v55 = vsel %vm183_vm10, %v181_v52, %v182_v53 }
 0x19e   :  { %v191_v51 = vadd.f32 %v247_v50, %v245_v49  ;;  %vm195_vm11 = vcmp.eq.s32.totalorder %v143_v22, %v184_v55 }
 0x1a0   :  { %248 = vrcp.f32 %v191_v51 }
 0x1aa   :  { %v249_v54 = vpop.eup %248 }
 0x1ab   :  { %v193_v56 = vmul.f32 %v249_v54, %v245_v49  ;;  %v196_v57 = vmul.f32 %v249_v54, %v247_v50 }
 0x1ad   :  { %v194_v58 = vsel %vm164_vm6, %v193_v56, 0.0 }
 0x1ae   :  { %v197_v59 = vsel %vm195_vm11, %v196_v57, %v194_v58 }
 0x1af   :  { %198 = vst.msk [vmem:[#allocation2] sm:$0xff] %vm144_vm1, %v197_v59 }
 0x1b0   :  { %261 = shalt.err (!%p258_p4)
}
 0x1b1   :  { %s262_s28 = scalar_lea.hbm %s341_s3, 128 }
 0x1b2   :  { %p263_p5 = scmp.ne.s32.totalorder %s341_s3, %s262_s28  ;;  %p266_p6 = scmp.lt.u32.totalorder %s262_s28, %s341_s3 }
 0x1b4   :  { %p268_p7 = pnand %p266_p6, %p263_p5 }
 0x1b6   :  { %271 = shalt.err (!%p268_p7)
}
 0x1b7   :  { %208 = dma.vmem_to_hbm [thread:$0]  %s206_s2, 128, %s341_s3, [#allocation3]  }
 0x1b8   :  { %272 = dma.done.wait [#allocation3], 128  }
 0x1b9   :  { %273 = vsyncadd [#allocation3], 4294967168 }
 0x1ba   :  { %212 = vsyncpa [#allocation3], 1 }

</bundles_post_ra>
